<compile_context>
chip_gen: v7x
topology: tpu7x:2x2x1
jax: 0.10.0
libtpu: 0.0.40
codegen_flags: <defaults>
</compile_context>

<pallas_src>
import jax
import jax.numpy as jnp
from jax.experimental import pallas as pl
from jax.experimental.pallas import tpu as pltpu

_LANES = 128
_SUBLANES = 8


def _round_up(x: int, m: int) -> int:
    return ((x + m - 1) // m) * m


def _mse_partial_kernel(p_ref, t_ref, o_ref):
    """Per-block partial sum of squared differences, kept vreg-shaped (8,128)."""
    p = p_ref[...]
    t = t_ref[...]
    # Only cast when the source dtype is not already f32 (e.g. bf16 inputs):
    # keeps HBM traffic at the source width and avoids redundant VPU casts.
    if p.dtype != jnp.float32:
        p = p.astype(jnp.float32)
    if t.dtype != jnp.float32:
        t = t.astype(jnp.float32)
    d = p - t
    sq = d * d
    tm = sq.shape[0]
    # (tm, 128) -> (tm//8, 8, 128) is a no-op view of the sublane tiling;
    # summing the leading axis is vreg-wise elementwise adds (pure VPU).
    partial = jnp.sum(sq.reshape(tm // _SUBLANES, _SUBLANES, _LANES), axis=0)
    o_ref[0] = partial


def mse_loss(predictions: jax.Array, targets: jax.Array) -> jax.Array:
    """Pallas TPU implementation of torch.nn.functional.mse_loss (mean reduction)."""
    assert predictions.shape == targets.shape
    total = predictions.size
    out_dtype = predictions.dtype

    # Flatten to a lane-friendly (rows, 128) slab; zero-pad the tail.
    rows = -(-total // _LANES)
    # Row tile: ~2 MiB per f32 input block (4096 x 128 x 4B).  Clamp for small
    # inputs; always a multiple of 8 (sublane).
    tm = min(4096, _round_up(rows, _SUBLANES))
    padded_rows = _round_up(rows, tm)
    padded_total = padded_rows * _LANES

    p_flat = predictions.reshape(-1)
    t_flat = targets.reshape(-1)
    if padded_total != total:
        pad = padded_total - total
        p_flat = jnp.pad(p_flat, (0, pad))
        t_flat = jnp.pad(t_flat, (0, pad))
    p2 = p_flat.reshape(padded_rows, _LANES)
    t2 = t_flat.reshape(padded_rows, _LANES)

    num_blocks = padded_rows // tm

    partials = pl.pallas_call(
        _mse_partial_kernel,
        out_shape=jax.ShapeDtypeStruct((num_blocks, _SUBLANES, _LANES), jnp.float32),
        grid_spec=pltpu.PrefetchScalarGridSpec(
            num_scalar_prefetch=0,
            grid=(num_blocks,),
            in_specs=[
                pl.BlockSpec((tm, _LANES), lambda i: (i, 0)),
                pl.BlockSpec((tm, _LANES), lambda i: (i, 0)),
            ],
            out_specs=pl.BlockSpec((1, _SUBLANES, _LANES), lambda i: (i, 0, 0)),
        ),
        compiler_params=pltpu.CompilerParams(
            # No cross-step accumulator -> axis is truly parallel (megacore on v7x).
            dimension_semantics=("parallel",),
            # 2 inputs x 2 pipeline buffers x 2 MiB = 8 MiB << 32 MiB; safe on
            # v5e (128 MiB phys), v6e (128 MiB), v7x (64 MiB phys / 32 MiB scoped).
            vmem_limit_bytes=32 * 1024 * 1024,
        ),
    )(p2, t2)

    # Single cross-lane/sublane reduction + normalization, done once.
    loss = jnp.sum(partials) / jnp.float32(total)
    return loss.astype(out_dtype)


if __name__ == "__main__":
    key = jax.random.PRNGKey(0)
    kp, kt = jax.random.split(key)

    # Small shapes consistent with the module's forward (elementwise + mean).
    shape = (128, 512)
    predictions = jax.random.normal(kp, shape, dtype=jnp.float32)
    targets = jax.random.normal(kt, shape, dtype=jnp.float32)

    loss = mse_loss(predictions, targets)
    loss = jax.block_until_ready(loss)

    # Sanity check against plain JAX reference.
    ref = jnp.mean((predictions - targets) ** 2)
    assert jnp.allclose(loss, ref, rtol=1e-5, atol=1e-6), (loss, ref)

    print("KERNEL_OK")
</pallas_src>

<mosaic_0001>
module attributes {stable_mosaic.version = 11 : i64} {
  func.func @_mse_partial_kernel(%arg0: i32, %arg1: memref<512x128xf32, #tpu.memory_space<vmem>>, %arg2: memref<512x128xf32, #tpu.memory_space<vmem>>, %arg3: memref<1x8x128xf32, #tpu.memory_space<vmem>>) attributes {dimension_semantics = [#tpu.dimension_semantics<parallel>], iteration_bounds = array<i64: 1>, scalar_prefetch = 0 : i64, scratch_operands = 0 : i64, tpu.core_type = #tpu.core_type<tc>, window_params = [{transform_indices = @transform_0, window_bounds = array<i64: 512, 128>}, {transform_indices = @transform_1, window_bounds = array<i64: 512, 128>}, {transform_indices = @transform_2, window_bounds = array<i64: 1, 8, 128>}]} {
    %c0 = arith.constant 0 : index
    %c0_0 = arith.constant 0 : index
    %0 = vector.load %arg1[%c0, %c0_0] : memref<512x128xf32, #tpu.memory_space<vmem>>, vector<512x128xf32>
    %c0_1 = arith.constant 0 : index
    %c0_2 = arith.constant 0 : index
    %1 = vector.load %arg2[%c0_1, %c0_2] : memref<512x128xf32, #tpu.memory_space<vmem>>, vector<512x128xf32>
    %2 = arith.subf %0, %1 : vector<512x128xf32>
    %3 = arith.mulf %2, %2 : vector<512x128xf32>
    %4 = vector.shape_cast %3 : vector<512x128xf32> to vector<64x8x128xf32>
    %cst = arith.constant dense<0.000000e+00> : vector<8x128xf32>
    %5 = vector.multi_reduction <add>, %4, %cst [0] : vector<64x8x128xf32> to vector<8x128xf32>
    %c0_3 = arith.constant 0 : index
    %c0_4 = arith.constant 0 : index
    %c0_5 = arith.constant 0 : index
    %6 = vector.load %arg3[%c0_3, %c0_4, %c0_5] : memref<1x8x128xf32, #tpu.memory_space<vmem>>, vector<1x8x128xf32>
    %7 = vector.shape_cast %6 : vector<1x8x128xf32> to vector<8x128xf32>
    %8 = vector.shape_cast %5 : vector<8x128xf32> to vector<1x8x128xf32>
    tpu.vector_store %arg3[%c0_3, %c0_4, %c0_5], %8 {strides = array<i32>} : memref<1x8x128xf32, #tpu.memory_space<vmem>>, vector<1x8x128xf32>,
    return
  }
  func.func @transform_0(%arg0: i32) -> (i32, i32) {
    %c0_i32 = arith.constant 0 : i32
    %c0_i32_0 = arith.constant 0 : i32
    return %arg0, %c0_i32 : i32, i32
  }
  func.func @transform_1(%arg0: i32) -> (i32, i32) {
    %c0_i32 = arith.constant 0 : i32
    %c0_i32_0 = arith.constant 0 : i32
    return %arg0, %c0_i32 : i32, i32
  }
  func.func @transform_2(%arg0: i32) -> (i32, i32, i32) {
    %c0_i32 = arith.constant 0 : i32
    %c0_i32_0 = arith.constant 0 : i32
    %c0_i32_1 = arith.constant 0 : i32
    return %arg0, %c0_i32, %c0_i32_0 : i32, i32, i32
  }
}

</mosaic_0001>

<bundles_post_ra>
// kernel: tpu_custom_call.1
= control target key start
LH: loop header
LB: loop body
LE: loop exit
PB: predicated region body
PF: predicated region fallthrough
CT: control target
= control target key end

     0   :  { %7 = vsyncpa [#allocation3], 0  ;;  %s509_s0 = inlined_call_operand.hbm [shape: f32[512,128], index: 0, kind: input, shape index: {}]   ;;  %s510_s1 = inlined_call_operand.hbm [shape: f32[512,128], index: 1, kind: input, shape index: {}]   ;;  %s511_s2 = inlined_call_operand.hbm [shape: f32[1,8,128], index: 2, kind: output, shape index: {}]  }
   0x1   :  { %8 = vsyncpa [#allocation6], 0 }
   0x2   :  { %9 = vsyncpa [#allocation4], 0  ;;  %s453_s9 = smov [#allocation2]   ;;  %s381_s13 = scalar_lea.hbm %s509_s0, 8192 }
   0x3   :  { %s15_s10 = sshll.u32 %s453_s9, 4  ;;  %p382_p0 = scmp.ne.s32.totalorder %s509_s0, %s381_s13  ;;  %s16_s10 = int_to_ptr.vmem [resolvable:$true] %s15_s10 }
   0x4   :  { %p385_p1 = scmp.lt.u32.totalorder %s381_s13, %s509_s0 }
   0x6   :  { %p387_p2 = pnand %p385_p1, %p382_p0 }
   0x8   :  { %390 = shalt.err (!%p387_p2)
}
   0x9   :  { %s391_s18 = scalar_lea.vmem %s16_s10, 8192  ;;  %p396_p4 = scmp.lt.s32.totalorder %s16_s10, %s16_s10 }
   0xa   :  { %p392_p3 = scmp.ne.s32.totalorder %s16_s10, %s391_s18  ;;  %p397_p5 = scmp.lt.s32.totalorder %s391_s18, %s391_s18 }
   0xc   :  { %p398_p6 = por %p397_p5, %p396_p4 }
   0xe   :  { %p399_p7 = pnand %p398_p6, %p392_p3 }
  0x10   :  { %402 = shalt.err (!%p399_p7)
}
  0x11   :  { %s454_s19 = smov 128   ;;  %s455_s20 = smov 8  }
  0x12   :  { %21 = dma.hbm_to_vmem [thread:$0]  %s509_s0, 8192, %s16_s10, [#allocation3], %s454_s19, %s454_s19, %s455_s20  }
  0x13   :  { %s456_s23 = smov [#allocation5]   ;;  %s403_s27 = scalar_lea.hbm %s510_s1, 8192 }
  0x14   :  { %s27_s24 = sshll.u32 %s456_s23, 4  ;;  %p404_p8 = scmp.ne.s32.totalorder %s510_s1, %s403_s27  ;;  %s28_s24 = int_to_ptr.vmem [resolvable:$true] %s27_s24 }
  0x15   :  { %p407_p9 = scmp.lt.u32.totalorder %s403_s27, %s510_s1 }
  0x17   :  { %p409_p10 = pnand %p407_p9, %p404_p8 }
  0x19   :  { %412 = shalt.err (!%p409_p10)
}
  0x1a   :  { %s413_s4 = scalar_lea.vmem %s28_s24, 8192  ;;  %p418_p12 = scmp.lt.s32.totalorder %s28_s24, %s28_s24 }
  0x1b   :  { %p414_p11 = scmp.ne.s32.totalorder %s28_s24, %s413_s4  ;;  %p419_p13 = scmp.lt.s32.totalorder %s413_s4, %s413_s4 }
  0x1d   :  { %p420_p0 = por %p419_p13, %p418_p12 }
  0x1f   :  { %p421_p1 = pnand %p420_p0, %p414_p11 }
  0x21   :  { %424 = shalt.err (!%p421_p1)
}
  0x22   :  { %33 = dma.hbm_to_vmem [thread:$0]  %s510_s1, 8192, %s28_s24, [#allocation6], %s454_s19, %s454_s19, %s455_s20  }
  0x23   :  { %447 = dma.done.wait [#allocation3], 8192  }
  0x24   :  { %448 = vsyncadd [#allocation3], 4294959104 }
  0x25   :  { %449 = dma.done.wait [#allocation6], 8192  }
  0x26   :  { %450 = vsyncadd [#allocation6], 4294959104  ;;  %v40_v0 = vld [vmem:[#allocation2] sm:$0xff]  ;;  %v41_v1 = vld [vmem:[#allocation2 + $0x8] sm:$0xff]  ;;  %s457_s1 = smov [#allocation7]  }
  0x27   :  { %v104_v2 = vld [vmem:[#allocation5] sm:$0xff]  ;;  %v105_v3 = vld [vmem:[#allocation5 + $0x8] sm:$0xff]  ;;  %v42_v4 = vld [vmem:[#allocation2 + $0x10] sm:$0xff]  ;;  %s366_s6 = sshll.u32 %s457_s1, 4  ;;  %s367_s6 = int_to_ptr.vmem [resolvable:$true] %s366_s6 }
  0x28   :  { %v106_v5 = vld [vmem:[#allocation5 + $0x10] sm:$0xff]  ;;  %v168_v6 = vsub.f32 %v40_v0, %v104_v2  ;;  %v169_v7 = vsub.f32 %v41_v1, %v105_v3  ;;  %v43_v8 = vld [vmem:[#allocation2 + $0x18] sm:$0xff]  ;;  %v44_v11 = vld [vmem:[#allocation2 + $0x20] sm:$0xff]  ;;  %s425_s7 = scalar_lea.vmem %s367_s6, 128  ;;  %p430_p3 = scmp.lt.s32.totalorder %s367_s6, %s367_s6 }
  0x29   :  { %v107_v9 = vld [vmem:[#allocation5 + $0x18] sm:$0xff]  ;;  %v170_v10 = vsub.f32 %v42_v4, %v106_v5  ;;  %v108_v12 = vld [vmem:[#allocation5 + $0x20] sm:$0xff]  ;;  %v45_v16 = vld [vmem:[#allocation2 + $0x28] sm:$0xff]  ;;  %p426_p2 = scmp.ne.s32.totalorder %s367_s6, %s425_s7  ;;  %p431_p4 = scmp.lt.s32.totalorder %s425_s7, %s425_s7 }
  0x2a   :  { %v171_v13 = vsub.f32 %v43_v8, %v107_v9  ;;  %v232_v14 = vmul.f32 %v168_v6, %v168_v6  ;;  %v233_v15 = vmul.f32 %v169_v7, %v169_v7  ;;  %v109_v17 = vld [vmem:[#allocation5 + $0x28] sm:$0xff]  ;;  %v172_v18 = vsub.f32 %v44_v11, %v108_v12  ;;  %v46_v20 = vld [vmem:[#allocation2 + $0x30] sm:$0xff]  ;;  %v47_v25 = vld [vmem:[#allocation2 + $0x38] sm:$0xff] }
  0x2b   :  { %v234_v19 = vmul.f32 %v170_v10, %v170_v10  ;;  %v110_v21 = vld [vmem:[#allocation5 + $0x30] sm:$0xff]  ;;  %v173_v22 = vsub.f32 %v45_v16, %v109_v17  ;;  %v111_v26 = vld [vmem:[#allocation5 + $0x38] sm:$0xff]  ;;  %v48_v30 = vld [vmem:[#allocation2 + $0x40] sm:$0xff]  ;;  %p432_p5 = por %p431_p4, %p430_p3 }
  0x2c   :  { %v235_v23 = vmul.f32 %v171_v13, %v171_v13  ;;  %v296_v24 = vadd.f32 %v233_v15, %v232_v14  ;;  %v174_v27 = vsub.f32 %v46_v20, %v110_v21  ;;  %v236_v28 = vmul.f32 %v172_v18, %v172_v18  ;;  %v112_v31 = vld [vmem:[#allocation5 + $0x40] sm:$0xff]  ;;  %v49_v35 = vld [vmem:[#allocation2 + $0x48] sm:$0xff]  ;;  %v50_v40 = vld [vmem:[#allocation2 + $0x50] sm:$0xff] }
  0x2d   :  { %v175_v32 = vsub.f32 %v47_v25, %v111_v26  ;;  %v237_v33 = vmul.f32 %v173_v22, %v173_v22  ;;  %v113_v36 = vld [vmem:[#allocation5 + $0x48] sm:$0xff]  ;;  %v176_v37 = vsub.f32 %v48_v30, %v112_v31  ;;  %v114_v41 = vld [vmem:[#allocation5 + $0x50] sm:$0xff]  ;;  %v51_v45 = vld [vmem:[#allocation2 + $0x58] sm:$0xff]  ;;  %p433_p6 = pnand %p432_p5, %p426_p2 }
  0x2e   :  { %v297_v29 = vadd.f32 %v296_v24, %v234_v19  ;;  %v238_v38 = vmul.f32 %v174_v27, %v174_v27  ;;  %v177_v42 = vsub.f32 %v49_v35, %v113_v36  ;;  %v115_v46 = vld [vmem:[#allocation5 + $0x58] sm:$0xff]  ;;  %v178_v47 = vsub.f32 %v50_v40, %v114_v41  ;;  %v52_v50 = vld [vmem:[#allocation2 + $0x60] sm:$0xff]  ;;  %v53_v55 = vld [vmem:[#allocation2 + $0x68] sm:$0xff] }
  0x2f   :  { %v239_v43 = vmul.f32 %v175_v32, %v175_v32  ;;  %v240_v48 = vmul.f32 %v176_v37, %v176_v37  ;;  %v116_v51 = vld [vmem:[#allocation5 + $0x60] sm:$0xff]  ;;  %v179_v52 = vsub.f32 %v51_v45, %v115_v46  ;;  %v117_v56 = vld [vmem:[#allocation5 + $0x68] sm:$0xff]  ;;  %v54_v60 = vld [vmem:[#allocation2 + $0x70] sm:$0xff] }
  0x30   :  { %v298_v34 = vadd.f32 %v297_v29, %v235_v23  ;;  %v241_v53 = vmul.f32 %v177_v42, %v177_v42  ;;  %v180_v57 = vsub.f32 %v52_v50, %v116_v51  ;;  %v242_v58 = vmul.f32 %v178_v47, %v178_v47  ;;  %v118_v61 = vld [vmem:[#allocation5 + $0x70] sm:$0xff]  ;;  %v55_v1 = vld [vmem:[#allocation2 + $0x78] sm:$0xff]  ;;  %v56_v6 = vld [vmem:[#allocation2 + $0x80] sm:$0xff] }
  0x31   :  { %v181_v62 = vsub.f32 %v53_v55, %v117_v56  ;;  %v243_v63 = vmul.f32 %v179_v52, %v179_v52  ;;  %v119_v2 = vld [vmem:[#allocation5 + $0x78] sm:$0xff]  ;;  %v182_v3 = vsub.f32 %v54_v60, %v118_v61  ;;  %v120_v7 = vld [vmem:[#allocation5 + $0x80] sm:$0xff]  ;;  %v57_v11 = vld [vmem:[#allocation2 + $0x88] sm:$0xff] }
  0x32   :  { %v299_v39 = vadd.f32 %v298_v34, %v236_v28  ;;  %v244_v4 = vmul.f32 %v180_v57, %v180_v57  ;;  %v183_v8 = vsub.f32 %v55_v1, %v119_v2  ;;  %v121_v12 = vld [vmem:[#allocation5 + $0x88] sm:$0xff]  ;;  %v184_v13 = vsub.f32 %v56_v6, %v120_v7  ;;  %v58_v16 = vld [vmem:[#allocation2 + $0x90] sm:$0xff]  ;;  %v59_v21 = vld [vmem:[#allocation2 + $0x98] sm:$0xff] }
  0x33   :  { %v245_v9 = vmul.f32 %v181_v62, %v181_v62  ;;  %v246_v14 = vmul.f32 %v182_v3, %v182_v3  ;;  %v122_v17 = vld [vmem:[#allocation5 + $0x90] sm:$0xff]  ;;  %v185_v18 = vsub.f32 %v57_v11, %v121_v12  ;;  %v123_v22 = vld [vmem:[#allocation5 + $0x98] sm:$0xff]  ;;  %v60_v26 = vld [vmem:[#allocation2 + $0xa0] sm:$0xff] }
  0x34   :  { %v300_v44 = vadd.f32 %v299_v39, %v237_v33  ;;  %v247_v19 = vmul.f32 %v183_v8, %v183_v8  ;;  %v186_v23 = vsub.f32 %v58_v16, %v122_v17  ;;  %v248_v24 = vmul.f32 %v184_v13, %v184_v13  ;;  %v124_v27 = vld [vmem:[#allocation5 + $0xa0] sm:$0xff]  ;;  %v61_v31 = vld [vmem:[#allocation2 + $0xa8] sm:$0xff]  ;;  %v62_v36 = vld [vmem:[#allocation2 + $0xb0] sm:$0xff] }
  0x35   :  { %v187_v28 = vsub.f32 %v59_v21, %v123_v22  ;;  %v249_v29 = vmul.f32 %v185_v18, %v185_v18  ;;  %v125_v32 = vld [vmem:[#allocation5 + $0xa8] sm:$0xff]  ;;  %v188_v33 = vsub.f32 %v60_v26, %v124_v27  ;;  %v126_v37 = vld [vmem:[#allocation5 + $0xb0] sm:$0xff]  ;;  %v63_v41 = vld [vmem:[#allocation2 + $0xb8] sm:$0xff] }
  0x36   :  { %v301_v49 = vadd.f32 %v300_v44, %v238_v38  ;;  %v250_v34 = vmul.f32 %v186_v23, %v186_v23  ;;  %v189_v38 = vsub.f32 %v61_v31, %v125_v32  ;;  %v127_v42 = vld [vmem:[#allocation5 + $0xb8] sm:$0xff]  ;;  %v64_v46 = vld [vmem:[#allocation2 + $0xc0] sm:$0xff]  ;;  %v65_v51 = vld [vmem:[#allocation2 + $0xc8] sm:$0xff] }
  0x37   :  { %v251_v39 = vmul.f32 %v187_v28, %v187_v28  ;;  %v252_v44 = vmul.f32 %v188_v33, %v188_v33  ;;  %v128_v47 = vld [vmem:[#allocation5 + $0xc0] sm:$0xff]  ;;  %v129_v52 = vld [vmem:[#allocation5 + $0xc8] sm:$0xff]  ;;  %v66_v56 = vld [vmem:[#allocation2 + $0xd0] sm:$0xff] }
  0x38   :  { %v302_v54 = vadd.f32 %v301_v49, %v239_v43  ;;  %v190_v43 = vsub.f32 %v62_v36, %v126_v37  ;;  %v253_v49 = vmul.f32 %v189_v38, %v189_v38  ;;  %v130_v57 = vld [vmem:[#allocation5 + $0xd0] sm:$0xff]  ;;  %v67_v61 = vld [vmem:[#allocation2 + $0xd8] sm:$0xff]  ;;  %v68_v2 = vld [vmem:[#allocation2 + $0xe0] sm:$0xff] }
  0x39   :  { %v131_v62 = vld [vmem:[#allocation5 + $0xd8] sm:$0xff]  ;;  %v132_v3 = vld [vmem:[#allocation5 + $0xe0] sm:$0xff]  ;;  %v69_v7 = vld [vmem:[#allocation2 + $0xe8] sm:$0xff] }
  0x3a   :  { %v303_v59 = vadd.f32 %v302_v54, %v240_v48  ;;  %v191_v48 = vsub.f32 %v63_v41, %v127_v42  ;;  %v254_v54 = vmul.f32 %v190_v43, %v190_v43  ;;  %v133_v8 = vld [vmem:[#allocation5 + $0xe8] sm:$0xff]  ;;  %v70_v12 = vld [vmem:[#allocation2 + $0xf0] sm:$0xff]  ;;  %v71_v17 = vld [vmem:[#allocation2 + $0xf8] sm:$0xff] }
  0x3b   :  { %v134_v13 = vld [vmem:[#allocation5 + $0xf0] sm:$0xff]  ;;  %v135_v18 = vld [vmem:[#allocation5 + $0xf8] sm:$0xff]  ;;  %v72_v22 = vld [vmem:[#allocation2 + $0x100] sm:$0xff] }
  0x3c   :  { %v304_v0 = vadd.f32 %v303_v59, %v241_v53  ;;  %v192_v53 = vsub.f32 %v64_v46, %v128_v47  ;;  %v255_v59 = vmul.f32 %v191_v48, %v191_v48  ;;  %v136_v23 = vld [vmem:[#allocation5 + $0x100] sm:$0xff]  ;;  %v73_v27 = vld [vmem:[#allocation2 + $0x108] sm:$0xff]  ;;  %v74_v32 = vld [vmem:[#allocation2 + $0x110] sm:$0xff] }
  0x3d   :  { %v137_v28 = vld [vmem:[#allocation5 + $0x108] sm:$0xff]  ;;  %v138_v33 = vld [vmem:[#allocation5 + $0x110] sm:$0xff]  ;;  %v75_v37 = vld [vmem:[#allocation2 + $0x118] sm:$0xff] }
  0x3e   :  { %v305_v5 = vadd.f32 %v304_v0, %v242_v58  ;;  %v193_v58 = vsub.f32 %v65_v51, %v129_v52  ;;  %v256_v0 = vmul.f32 %v192_v53, %v192_v53  ;;  %v139_v38 = vld [vmem:[#allocation5 + $0x118] sm:$0xff]  ;;  %v76_v42 = vld [vmem:[#allocation2 + $0x120] sm:$0xff]  ;;  %v77_v47 = vld [vmem:[#allocation2 + $0x128] sm:$0xff] }
  0x3f   :  { %v140_v43 = vld [vmem:[#allocation5 + $0x120] sm:$0xff]  ;;  %v141_v48 = vld [vmem:[#allocation5 + $0x128] sm:$0xff]  ;;  %v78_v52 = vld [vmem:[#allocation2 + $0x130] sm:$0xff] }
  0x40   :  { %v306_v10 = vadd.f32 %v305_v5, %v243_v63  ;;  %v194_v63 = vsub.f32 %v66_v56, %v130_v57  ;;  %v257_v5 = vmul.f32 %v193_v58, %v193_v58  ;;  %v142_v53 = vld [vmem:[#allocation5 + $0x130] sm:$0xff]  ;;  %v79_v57 = vld [vmem:[#allocation2 + $0x138] sm:$0xff] }
  0x41   :  { %v143_v58 = vld [vmem:[#allocation5 + $0x138] sm:$0xff] }
  0x42   :  { %v307_v15 = vadd.f32 %v306_v10, %v244_v4  ;;  %v195_v4 = vsub.f32 %v67_v61, %v131_v62  ;;  %v258_v10 = vmul.f32 %v194_v63, %v194_v63  ;;  %v80_v62 = vld [vmem:[#allocation2 + $0x140] sm:$0xff] }
  0x43   :  { %v144_v63 = vld [vmem:[#allocation5 + $0x140] sm:$0xff] }
  0x44   :  { %v308_v20 = vadd.f32 %v307_v15, %v245_v9  ;;  %v196_v9 = vsub.f32 %v68_v2, %v132_v3  ;;  %v259_v15 = vmul.f32 %v195_v4, %v195_v4  ;;  %v81_v3 = vld [vmem:[#allocation2 + $0x148] sm:$0xff] }
  0x45   :  { %v145_v4 = vld [vmem:[#allocation5 + $0x148] sm:$0xff] }
  0x46   :  { %v309_v25 = vadd.f32 %v308_v20, %v246_v14  ;;  %v197_v14 = vsub.f32 %v69_v7, %v133_v8  ;;  %v260_v20 = vmul.f32 %v196_v9, %v196_v9  ;;  %v82_v8 = vld [vmem:[#allocation2 + $0x150] sm:$0xff] }
  0x47   :  { %v146_v9 = vld [vmem:[#allocation5 + $0x150] sm:$0xff] }
  0x48   :  { %v310_v30 = vadd.f32 %v309_v25, %v247_v19  ;;  %v198_v19 = vsub.f32 %v70_v12, %v134_v13  ;;  %v261_v25 = vmul.f32 %v197_v14, %v197_v14  ;;  %v83_v13 = vld [vmem:[#allocation2 + $0x158] sm:$0xff] }
  0x49   :  { %v147_v14 = vld [vmem:[#allocation5 + $0x158] sm:$0xff] }
  0x4a   :  { %v311_v35 = vadd.f32 %v310_v30, %v248_v24  ;;  %v199_v24 = vsub.f32 %v71_v17, %v135_v18  ;;  %v262_v30 = vmul.f32 %v198_v19, %v198_v19  ;;  %v84_v18 = vld [vmem:[#allocation2 + $0x160] sm:$0xff] }
  0x4b   :  { %v148_v19 = vld [vmem:[#allocation5 + $0x160] sm:$0xff] }
  0x4c   :  { %v312_v40 = vadd.f32 %v311_v35, %v249_v29  ;;  %v200_v29 = vsub.f32 %v72_v22, %v136_v23  ;;  %v263_v35 = vmul.f32 %v199_v24, %v199_v24  ;;  %v85_v23 = vld [vmem:[#allocation2 + $0x168] sm:$0xff] }
  0x4d   :  { %v149_v24 = vld [vmem:[#allocation5 + $0x168] sm:$0xff] }
  0x4e   :  { %v313_v45 = vadd.f32 %v312_v40, %v250_v34  ;;  %v201_v34 = vsub.f32 %v73_v27, %v137_v28  ;;  %v264_v40 = vmul.f32 %v200_v29, %v200_v29  ;;  %v86_v28 = vld [vmem:[#allocation2 + $0x170] sm:$0xff] }
  0x4f   :  { %v150_v29 = vld [vmem:[#allocation5 + $0x170] sm:$0xff] }
  0x50   :  { %v314_v50 = vadd.f32 %v313_v45, %v251_v39  ;;  %v202_v39 = vsub.f32 %v74_v32, %v138_v33  ;;  %v265_v45 = vmul.f32 %v201_v34, %v201_v34  ;;  %v87_v33 = vld [vmem:[#allocation2 + $0x178] sm:$0xff] }
  0x51   :  { %v151_v34 = vld [vmem:[#allocation5 + $0x178] sm:$0xff] }
  0x52   :  { %v315_v55 = vadd.f32 %v314_v50, %v252_v44  ;;  %v203_v44 = vsub.f32 %v75_v37, %v139_v38  ;;  %v266_v50 = vmul.f32 %v202_v39, %v202_v39  ;;  %v88_v38 = vld [vmem:[#allocation2 + $0x180] sm:$0xff] }
  0x53   :  { %v152_v39 = vld [vmem:[#allocation5 + $0x180] sm:$0xff] }
  0x54   :  { %v316_v60 = vadd.f32 %v315_v55, %v253_v49  ;;  %v204_v49 = vsub.f32 %v76_v42, %v140_v43  ;;  %v267_v55 = vmul.f32 %v203_v44, %v203_v44  ;;  %v89_v43 = vld [vmem:[#allocation2 + $0x188] sm:$0xff] }
  0x55   :  { %v153_v44 = vld [vmem:[#allocation5 + $0x188] sm:$0xff] }
  0x56   :  { %v317_v1 = vadd.f32 %v316_v60, %v254_v54  ;;  %v205_v54 = vsub.f32 %v77_v47, %v141_v48  ;;  %v268_v60 = vmul.f32 %v204_v49, %v204_v49  ;;  %v90_v48 = vld [vmem:[#allocation2 + $0x190] sm:$0xff] }
  0x57   :  { %v154_v49 = vld [vmem:[#allocation5 + $0x190] sm:$0xff] }
  0x58   :  { %v318_v6 = vadd.f32 %v317_v1, %v255_v59  ;;  %v206_v59 = vsub.f32 %v78_v52, %v142_v53  ;;  %v269_v1 = vmul.f32 %v205_v54, %v205_v54  ;;  %v91_v53 = vld [vmem:[#allocation2 + $0x198] sm:$0xff] }
  0x59   :  { %v155_v54 = vld [vmem:[#allocation5 + $0x198] sm:$0xff] }
  0x5a   :  { %v319_v11 = vadd.f32 %v318_v6, %v256_v0  ;;  %v207_v0 = vsub.f32 %v79_v57, %v143_v58  ;;  %v270_v6 = vmul.f32 %v206_v59, %v206_v59  ;;  %v92_v58 = vld [vmem:[#allocation2 + $0x1a0] sm:$0xff] }
  0x5b   :  { %v156_v59 = vld [vmem:[#allocation5 + $0x1a0] sm:$0xff] }
  0x5c   :  { %v320_v16 = vadd.f32 %v319_v11, %v257_v5  ;;  %v208_v5 = vsub.f32 %v80_v62, %v144_v63  ;;  %v271_v11 = vmul.f32 %v207_v0, %v207_v0  ;;  %v93_v63 = vld [vmem:[#allocation2 + $0x1a8] sm:$0xff] }
  0x5d   :  { %v157_v0 = vld [vmem:[#allocation5 + $0x1a8] sm:$0xff] }
  0x5e   :  { %v321_v21 = vadd.f32 %v320_v16, %v258_v10  ;;  %v209_v10 = vsub.f32 %v81_v3, %v145_v4  ;;  %v272_v16 = vmul.f32 %v208_v5, %v208_v5  ;;  %v94_v4 = vld [vmem:[#allocation2 + $0x1b0] sm:$0xff] }
  0x5f   :  { %v158_v5 = vld [vmem:[#allocation5 + $0x1b0] sm:$0xff] }
  0x60   :  { %v322_v26 = vadd.f32 %v321_v21, %v259_v15  ;;  %v210_v15 = vsub.f32 %v82_v8, %v146_v9  ;;  %v273_v21 = vmul.f32 %v209_v10, %v209_v10  ;;  %v95_v9 = vld [vmem:[#allocation2 + $0x1b8] sm:$0xff] }
  0x61   :  { %v159_v10 = vld [vmem:[#allocation5 + $0x1b8] sm:$0xff] }
  0x62   :  { %v323_v31 = vadd.f32 %v322_v26, %v260_v20  ;;  %v211_v20 = vsub.f32 %v83_v13, %v147_v14  ;;  %v274_v26 = vmul.f32 %v210_v15, %v210_v15  ;;  %v96_v14 = vld [vmem:[#allocation2 + $0x1c0] sm:$0xff] }
  0x63   :  { %v160_v15 = vld [vmem:[#allocation5 + $0x1c0] sm:$0xff] }
  0x64   :  { %v324_v36 = vadd.f32 %v323_v31, %v261_v25  ;;  %v212_v25 = vsub.f32 %v84_v18, %v148_v19  ;;  %v275_v31 = vmul.f32 %v211_v20, %v211_v20  ;;  %v97_v19 = vld [vmem:[#allocation2 + $0x1c8] sm:$0xff] }
  0x65   :  { %v161_v20 = vld [vmem:[#allocation5 + $0x1c8] sm:$0xff] }
  0x66   :  { %v325_v41 = vadd.f32 %v324_v36, %v262_v30  ;;  %v213_v30 = vsub.f32 %v85_v23, %v149_v24  ;;  %v276_v36 = vmul.f32 %v212_v25, %v212_v25  ;;  %v98_v24 = vld [vmem:[#allocation2 + $0x1d0] sm:$0xff] }
  0x67   :  { %v162_v25 = vld [vmem:[#allocation5 + $0x1d0] sm:$0xff] }
  0x68   :  { %v326_v46 = vadd.f32 %v325_v41, %v263_v35  ;;  %v214_v35 = vsub.f32 %v86_v28, %v150_v29  ;;  %v277_v41 = vmul.f32 %v213_v30, %v213_v30  ;;  %v99_v29 = vld [vmem:[#allocation2 + $0x1d8] sm:$0xff] }
  0x69   :  { %v163_v30 = vld [vmem:[#allocation5 + $0x1d8] sm:$0xff] }
  0x6a   :  { %v327_v51 = vadd.f32 %v326_v46, %v264_v40  ;;  %v215_v40 = vsub.f32 %v87_v33, %v151_v34  ;;  %v278_v46 = vmul.f32 %v214_v35, %v214_v35  ;;  %v100_v34 = vld [vmem:[#allocation2 + $0x1e0] sm:$0xff] }
  0x6b   :  { %v164_v35 = vld [vmem:[#allocation5 + $0x1e0] sm:$0xff] }
  0x6c   :  { %v328_v56 = vadd.f32 %v327_v51, %v265_v45  ;;  %v216_v45 = vsub.f32 %v88_v38, %v152_v39  ;;  %v279_v51 = vmul.f32 %v215_v40, %v215_v40  ;;  %v101_v39 = vld [vmem:[#allocation2 + $0x1e8] sm:$0xff] }
  0x6d   :  { %v165_v40 = vld [vmem:[#allocation5 + $0x1e8] sm:$0xff] }
  0x6e   :  { %v329_v61 = vadd.f32 %v328_v56, %v266_v50  ;;  %v217_v50 = vsub.f32 %v89_v43, %v153_v44  ;;  %v280_v56 = vmul.f32 %v216_v45, %v216_v45  ;;  %v102_v44 = vld [vmem:[#allocation2 + $0x1f0] sm:$0xff] }
  0x6f   :  { %v166_v45 = vld [vmem:[#allocation5 + $0x1f0] sm:$0xff] }
  0x70   :  { %v330_v2 = vadd.f32 %v329_v61, %v267_v55  ;;  %v218_v55 = vsub.f32 %v90_v48, %v154_v49  ;;  %v281_v61 = vmul.f32 %v217_v50, %v217_v50  ;;  %v103_v49 = vld [vmem:[#allocation2 + $0x1f8] sm:$0xff] }
  0x71   :  { %v167_v50 = vld [vmem:[#allocation5 + $0x1f8] sm:$0xff] }
  0x72   :  { %v331_v7 = vadd.f32 %v330_v2, %v268_v60  ;;  %v219_v60 = vsub.f32 %v91_v53, %v155_v54  ;;  %v282_v2 = vmul.f32 %v218_v55, %v218_v55  ;;  %v231_v54 = vsub.f32 %v103_v49, %v167_v50 }
  0x74   :  { %v332_v12 = vadd.f32 %v331_v7, %v269_v1  ;;  %v220_v1 = vsub.f32 %v92_v58, %v156_v59  ;;  %v283_v7 = vmul.f32 %v219_v60, %v219_v60  ;;  %v295_v59 = vmul.f32 %v231_v54, %v231_v54 }
  0x76   :  { %v333_v17 = vadd.f32 %v332_v12, %v270_v6  ;;  %v221_v6 = vsub.f32 %v93_v63, %v157_v0  ;;  %v284_v12 = vmul.f32 %v220_v1, %v220_v1 }
  0x78   :  { %v334_v22 = vadd.f32 %v333_v17, %v271_v11  ;;  %v222_v11 = vsub.f32 %v94_v4, %v158_v5  ;;  %v285_v17 = vmul.f32 %v221_v6, %v221_v6 }
  0x7a   :  { %v335_v27 = vadd.f32 %v334_v22, %v272_v16  ;;  %v223_v16 = vsub.f32 %v95_v9, %v159_v10  ;;  %v286_v22 = vmul.f32 %v222_v11, %v222_v11 }
  0x7c   :  { %v336_v32 = vadd.f32 %v335_v27, %v273_v21  ;;  %v224_v21 = vsub.f32 %v96_v14, %v160_v15  ;;  %v287_v27 = vmul.f32 %v223_v16, %v223_v16 }
  0x7e   :  { %v337_v37 = vadd.f32 %v336_v32, %v274_v26  ;;  %v225_v26 = vsub.f32 %v97_v19, %v161_v20  ;;  %v288_v32 = vmul.f32 %v224_v21, %v224_v21 }
  0x80   :  { %v338_v42 = vadd.f32 %v337_v37, %v275_v31  ;;  %v226_v31 = vsub.f32 %v98_v24, %v162_v25  ;;  %v289_v37 = vmul.f32 %v225_v26, %v225_v26 }
  0x82   :  { %v339_v47 = vadd.f32 %v338_v42, %v276_v36  ;;  %v227_v36 = vsub.f32 %v99_v29, %v163_v30  ;;  %v290_v42 = vmul.f32 %v226_v31, %v226_v31 }
  0x84   :  { %v340_v52 = vadd.f32 %v339_v47, %v277_v41  ;;  %v228_v41 = vsub.f32 %v100_v34, %v164_v35  ;;  %v291_v47 = vmul.f32 %v227_v36, %v227_v36 }
  0x86   :  { %v341_v57 = vadd.f32 %v340_v52, %v278_v46  ;;  %v229_v46 = vsub.f32 %v101_v39, %v165_v40  ;;  %v292_v52 = vmul.f32 %v228_v41, %v228_v41 }
  0x88   :  { %v342_v62 = vadd.f32 %v341_v57, %v279_v51  ;;  %v230_v51 = vsub.f32 %v102_v44, %v166_v45  ;;  %v293_v55 = vmul.f32 %v229_v46, %v229_v46 }
  0x8a   :  { %v343_v3 = vadd.f32 %v342_v62, %v280_v56  ;;  %v294_v57 = vmul.f32 %v230_v51, %v230_v51 }
  0x8c   :  { %v344_v8 = vadd.f32 %v343_v3, %v281_v61 }
  0x8e   :  { %v345_v13 = vadd.f32 %v344_v8, %v282_v2 }
  0x90   :  { %v346_v18 = vadd.f32 %v345_v13, %v283_v7 }
  0x92   :  { %v347_v23 = vadd.f32 %v346_v18, %v284_v12 }
  0x94   :  { %v348_v28 = vadd.f32 %v347_v23, %v285_v17 }
  0x96   :  { %v349_v33 = vadd.f32 %v348_v28, %v286_v22 }
  0x98   :  { %v350_v38 = vadd.f32 %v349_v33, %v287_v27 }
  0x9a   :  { %v351_v43 = vadd.f32 %v350_v38, %v288_v32 }
  0x9c   :  { %v352_v48 = vadd.f32 %v351_v43, %v289_v37 }
  0x9e   :  { %v353_v53 = vadd.f32 %v352_v48, %v290_v42 }
  0xa0   :  { %v354_v56 = vadd.f32 %v353_v53, %v291_v47 }
  0xa2   :  { %v355_v58 = vadd.f32 %v354_v56, %v292_v52 }
  0xa4   :  { %v356_v60 = vadd.f32 %v355_v58, %v293_v55 }
  0xa6   :  { %v357_v61 = vadd.f32 %v356_v60, %v294_v57 }
  0xa8   :  { %v358_v62 = vadd.f32 %v357_v61, %v295_v59 }
  0xaa   :  { %359 = vst [vmem:[#allocation7] sm:$0xff] %v358_v62 }
  0xab   :  { %436 = shalt.err (!%p433_p6)
}
  0xac   :  { %s437_s10 = scalar_lea.hbm %s511_s2, 128 }
  0xad   :  { %p438_p7 = scmp.ne.s32.totalorder %s511_s2, %s437_s10  ;;  %p441_p8 = scmp.lt.u32.totalorder %s437_s10, %s511_s2 }
  0xaf   :  { %p443_p9 = pnand %p441_p8, %p438_p7 }
  0xb1   :  { %446 = shalt.err (!%p443_p9)
}
  0xb2   :  { %369 = dma.vmem_to_hbm [thread:$0]  %s367_s6, 128, %s511_s2, [#allocation4]  }
  0xb3   :  { %451 = dma.done.wait [#allocation4], 128  }
  0xb4   :  { %452 = vsyncadd [#allocation4], 4294967168 }
  0xb5   :  { %373 = vsyncpa [#allocation3], 1 }
  0xb6   :  { %374 = vsyncpa [#allocation6], 1 }
  0xb7   :  { %375 = vsyncpa [#allocation4], 1 }

</bundles_post_ra>
